<compile_context>
chip_gen: v7x
topology: tpu7x:2x2x1
jax: 0.10.0
libtpu: 0.0.40
codegen_flags: <defaults>
</compile_context>

<pallas_src>
import functools

import jax
import jax.numpy as jnp
from jax import lax
from jax.experimental import pallas as pl
from jax.experimental.pallas import tpu as pltpu


_STRIP = 256  # rows per inner sub-step; keeps the f32 hidden tile well under 64 vregs.


def mlp_kernel(x_ref, w0_ref, b0_ref, w1_ref, b1_ref, w2_ref, b2_ref, o_ref, *, strip):
    # Hoist the constant weight/bias loads out of the strip loop.
    w0 = w0_ref[...]
    b0 = b0_ref[...]
    w1 = w1_ref[...]
    b1 = b1_ref[...]
    w2 = w2_ref[...]
    b2 = b2_ref[...]

    n_strips = x_ref.shape[0] // strip  # static

    def body(s, carry):
        r0 = pl.multiple_of(s * strip, strip)
        xs = x_ref[pl.ds(r0, strip), :]

        # Layer 0: Linear(C -> W) + ReLU. bf16 MXU inputs, f32 accumulation.
        h = jnp.dot(xs, w0, preferred_element_type=jnp.float32)
        h = jnp.maximum(h + b0, 0.0)

        # Layer 1: Linear(W -> W) + ReLU.
        h = jnp.dot(h.astype(w1.dtype), w1, preferred_element_type=jnp.float32)
        h = jnp.maximum(h + b1, 0.0)

        # Output layer: Linear(W -> O), no activation, unpadded store.
        y = jnp.dot(h.astype(w2.dtype), w2, preferred_element_type=jnp.float32)
        o_ref[pl.ds(r0, strip), :] = (y + b2).astype(o_ref.dtype)
        return carry

    lax.fori_loop(0, n_strips, body, 0, unroll=True)


def _round_up(x, m):
    return ((x + m - 1) // m) * m


def _choose_batch_tile(B, max_tile=1024):
    """Adaptive batch tile: big for large B, clamped for small B, >=2 grid steps
    whenever B >= 16 so v7x's two TensorCores both get work."""
    b8 = _round_up(B, 8)
    if b8 < 16:
        return b8
    tile = min(max_tile, _round_up(pl.cdiv(b8, 2), 8))
    if tile > _STRIP:
        tile = (tile // _STRIP) * _STRIP  # keep the inner strip loop exact
    return max(tile, 8)


def _run(x, w0, b0, w1, b1, w2, b2, *, batch_tile, strip, out_dtype):
    B_pad, C = x.shape
    W = w0.shape[1]
    O = w2.shape[1]
    grid = (B_pad // batch_tile,)

    # Weight/bias blocks never change across the grid (index_map == (0, 0));
    # they are tiny at these widths, so default double-buffering is harmless.
    const = lambda shape: pl.BlockSpec(shape, lambda i: (0, 0))

    return pl.pallas_call(
        functools.partial(mlp_kernel, strip=strip),
        out_shape=jax.ShapeDtypeStruct((B_pad, O), out_dtype),
        grid_spec=pltpu.PrefetchScalarGridSpec(
            num_scalar_prefetch=0,
            grid=grid,
            in_specs=[
                pl.BlockSpec((batch_tile, C), lambda i: (i, 0)),  # x tile
                const((C, W)),  # w0
                const((1, W)),  # b0
                const((W, W)),  # w1
                const((1, W)),  # b1
                const((W, O)),  # w2
                const((1, O)),  # b2
            ],
            out_specs=pl.BlockSpec((batch_tile, O), lambda i: (i, 0)),
        ),
        compiler_params=pltpu.CompilerParams(
            dimension_semantics=("parallel",),
        ),
    )(x, w0, b0, w1, b1, w2, b2)


def mlps_forward(x, params, *, max_batch_tile=1024, compute_dtype=jnp.bfloat16):
    """x: [B, num_channels] (f32); params: dict of pre-transposed weights/biases."""
    B, C = x.shape
    w0, b0 = params["w0"], params["b0"]  # (C, W), (1, W)
    w1, b1 = params["w1"], params["b1"]  # (W, W), (1, W)
    w2, b2 = params["w2"], params["b2"]  # (W, O), (1, O)

    batch_tile = _choose_batch_tile(B, max_batch_tile)
    strip = _STRIP if batch_tile % _STRIP == 0 else batch_tile
    B_pad = _round_up(B, batch_tile)

    # bf16 MXU inputs; biases kept f32 (added onto the f32 accumulator).
    x_c = x.astype(compute_dtype)
    if B_pad != B:
        x_c = jnp.pad(x_c, ((0, B_pad - B), (0, 0)))
    w0c, w1c, w2c = (w.astype(compute_dtype) for w in (w0, w1, w2))
    b0f, b1f, b2f = (b.astype(jnp.float32) for b in (b0, b1, b2))

    out = _run(x_c, w0c, b0f, w1c, b1f, w2c, b2f,
               batch_tile=batch_tile, strip=strip, out_dtype=x.dtype)
    return out[:B]


def init_params(key, num_channels, width, out_channels):
    """Deterministic init mimicking nn.Linear's U(-1/sqrt(fan_in), 1/sqrt(fan_in)).
    Weights stored pre-transposed to (in, out)."""
    keys = jax.random.split(key, 6)

    def linear(kw, kb, fan_in, fan_out):
        bound = 1.0 / jnp.sqrt(jnp.float32(fan_in))
        w = jax.random.uniform(kw, (fan_in, fan_out), jnp.float32, -bound, bound)
        b = jax.random.uniform(kb, (1, fan_out), jnp.float32, -bound, bound)
        return w, b

    w0, b0 = linear(keys[0], keys[1], num_channels, width)
    w1, b1 = linear(keys[2], keys[3], width, width)
    w2, b2 = linear(keys[4], keys[5], width, out_channels)
    return {"w0": w0, "b0": b0, "w1": w1, "b1": b1, "w2": w2, "b2": b2}


def mlps_reference(x, p):
    h = jnp.maximum(x @ p["w0"] + p["b0"], 0.0)
    h = jnp.maximum(h @ p["w1"] + p["b1"], 0.0)
    return h @ p["w2"] + p["b2"]


if __name__ == "__main__":
    num_channels, width, out_channels = 16, 32, 8
    batch = 16

    key = jax.random.PRNGKey(0)
    k_params, k_x = jax.random.split(key)
    params = init_params(k_params, num_channels, width, out_channels)
    x = jax.random.normal(k_x, (batch, num_channels), jnp.float32)

    out = mlps_forward(x, params)
    out = jax.block_until_ready(out)

    ref = mlps_reference(x, params)
    assert out.shape == (batch, out_channels), out.shape
    # bf16 MXU inputs with f32 accumulation -> loosened tolerance vs f32 reference.
    assert jnp.allclose(out, ref, atol=2e-2, rtol=2e-2), "mismatch vs reference"

    print("KERNEL_OK")
</pallas_src>

<mosaic_0001>
module attributes {stable_mosaic.version = 11 : i64} {
  func.func @mlp_kernel(%arg0: i32, %arg1: memref<8x16xbf16, #tpu.memory_space<vmem>>, %arg2: memref<16x32xbf16, #tpu.memory_space<vmem>>, %arg3: memref<1x32xf32, #tpu.memory_space<vmem>>, %arg4: memref<32x32xbf16, #tpu.memory_space<vmem>>, %arg5: memref<1x32xf32, #tpu.memory_space<vmem>>, %arg6: memref<32x8xbf16, #tpu.memory_space<vmem>>, %arg7: memref<1x8xf32, #tpu.memory_space<vmem>>, %arg8: memref<8x8xf32, #tpu.memory_space<vmem>>) attributes {dimension_semantics = [#tpu.dimension_semantics<parallel>], iteration_bounds = array<i64: 2>, scalar_prefetch = 0 : i64, scratch_operands = 0 : i64, tpu.core_type = #tpu.core_type<tc>, window_params = [{transform_indices = @transform_0, window_bounds = array<i64: 8, 16>}, {pipeline_mode = #tpu.pipeline_mode<synchronous>, transform_indices = @transform_1, window_bounds = array<i64: 16, 32>}, {pipeline_mode = #tpu.pipeline_mode<synchronous>, transform_indices = @transform_2, window_bounds = array<i64: 1, 32>}, {pipeline_mode = #tpu.pipeline_mode<synchronous>, transform_indices = @transform_3, window_bounds = array<i64: 32, 32>}, {pipeline_mode = #tpu.pipeline_mode<synchronous>, transform_indices = @transform_4, window_bounds = array<i64: 1, 32>}, {pipeline_mode = #tpu.pipeline_mode<synchronous>, transform_indices = @transform_5, window_bounds = array<i64: 32, 8>}, {pipeline_mode = #tpu.pipeline_mode<synchronous>, transform_indices = @transform_6, window_bounds = array<i64: 1, 8>}, {transform_indices = @transform_7, window_bounds = array<i64: 8, 8>}]} {
    %c0 = arith.constant 0 : index
    %c0_0 = arith.constant 0 : index
    %0 = vector.load %arg2[%c0, %c0_0] : memref<16x32xbf16, #tpu.memory_space<vmem>>, vector<16x32xbf16>
    %c0_1 = arith.constant 0 : index
    %c0_2 = arith.constant 0 : index
    %1 = vector.load %arg3[%c0_1, %c0_2] : memref<1x32xf32, #tpu.memory_space<vmem>>, vector<1x32xf32>
    %c0_3 = arith.constant 0 : index
    %c0_4 = arith.constant 0 : index
    %2 = vector.load %arg4[%c0_3, %c0_4] : memref<32x32xbf16, #tpu.memory_space<vmem>>, vector<32x32xbf16>
    %c0_5 = arith.constant 0 : index
    %c0_6 = arith.constant 0 : index
    %3 = vector.load %arg5[%c0_5, %c0_6] : memref<1x32xf32, #tpu.memory_space<vmem>>, vector<1x32xf32>
    %c0_7 = arith.constant 0 : index
    %c0_8 = arith.constant 0 : index
    %4 = vector.load %arg6[%c0_7, %c0_8] : memref<32x8xbf16, #tpu.memory_space<vmem>>, vector<32x8xbf16>
    %c0_9 = arith.constant 0 : index
    %c0_10 = arith.constant 0 : index
    %5 = vector.load %arg7[%c0_9, %c0_10] : memref<1x8xf32, #tpu.memory_space<vmem>>, vector<1x8xf32>
    %c0_i32 = arith.constant 0 : i32
    %c8_i32 = arith.constant 8 : i32
    %6 = arith.muli %c0_i32, %c8_i32 : i32
    %7 = tpu.assume_multiple %6, 8 : i32
    %8 = arith.index_cast %7 : i32 to index
    %c0_11 = arith.constant 0 : index
    %9 = vector.load %arg1[%8, %c0_11] : memref<8x16xbf16, #tpu.memory_space<vmem>>, vector<8x16xbf16>
    %cst = arith.constant dense<0.000000e+00> : vector<8x32xf32>
    %10 = tpu.matmul %9, %0, %cst {dimension_numbers = #tpu.dot_dimension_numbers<[1], [0], [0], [1], [0, 0, 1, 1], [], []>} : vector<8x16xbf16>, vector<16x32xbf16>, vector<8x32xf32> -> vector<8x32xf32>
    %11 = vector.broadcast %1 : vector<1x32xf32> to vector<8x32xf32>
    %12 = arith.addf %10, %11 : vector<8x32xf32>
    %cst_12 = arith.constant 0.000000e+00 : f32
    %13 = vector.broadcast %cst_12 : f32 to vector<8x32xf32>
    %14 = arith.maximumf %12, %13 : vector<8x32xf32>
    %15 = arith.truncf %14 : vector<8x32xf32> to vector<8x32xbf16>
    %cst_13 = arith.constant dense<0.000000e+00> : vector<8x32xf32>
    %16 = tpu.matmul %15, %2, %cst_13 {dimension_numbers = #tpu.dot_dimension_numbers<[1], [0], [0], [1], [0, 0, 1, 1], [], []>} : vector<8x32xbf16>, vector<32x32xbf16>, vector<8x32xf32> -> vector<8x32xf32>
    %17 = vector.broadcast %3 : vector<1x32xf32> to vector<8x32xf32>
    %18 = arith.addf %16, %17 : vector<8x32xf32>
    %cst_14 = arith.constant 0.000000e+00 : f32
    %19 = vector.broadcast %cst_14 : f32 to vector<8x32xf32>
    %20 = arith.maximumf %18, %19 : vector<8x32xf32>
    %21 = arith.truncf %20 : vector<8x32xf32> to vector<8x32xbf16>
    %cst_15 = arith.constant dense<0.000000e+00> : vector<8x8xf32>
    %22 = tpu.matmul %21, %4, %cst_15 {dimension_numbers = #tpu.dot_dimension_numbers<[1], [0], [0], [1], [0, 0, 1, 1], [], []>} : vector<8x32xbf16>, vector<32x8xbf16>, vector<8x8xf32> -> vector<8x8xf32>
    %23 = vector.broadcast %5 : vector<1x8xf32> to vector<8x8xf32>
    %24 = arith.addf %22, %23 : vector<8x8xf32>
    %25 = arith.index_cast %7 : i32 to index
    %c0_16 = arith.constant 0 : index
    %26 = vector.load %arg8[%25, %c0_16] : memref<8x8xf32, #tpu.memory_space<vmem>>, vector<8x8xf32>
    tpu.vector_store %arg8[%25, %c0_16], %24 {strides = array<i32>} : memref<8x8xf32, #tpu.memory_space<vmem>>, vector<8x8xf32>,
    %c1_i32 = arith.constant 1 : i32
    return
  }
  func.func @transform_0(%arg0: i32) -> (i32, i32) {
    %c0_i32 = arith.constant 0 : i32
    %c0_i32_0 = arith.constant 0 : i32
    return %arg0, %c0_i32 : i32, i32
  }
  func.func @transform_1(%arg0: i32) -> (i32, i32) {
    %c0_i32 = arith.constant 0 : i32
    %c0_i32_0 = arith.constant 0 : i32
    %c0_i32_1 = arith.constant 0 : i32
    return %c0_i32, %c0_i32_0 : i32, i32
  }
  func.func @transform_2(%arg0: i32) -> (i32, i32) {
    %c0_i32 = arith.constant 0 : i32
    %c0_i32_0 = arith.constant 0 : i32
    %c0_i32_1 = arith.constant 0 : i32
    return %c0_i32, %c0_i32_0 : i32, i32
  }
  func.func @transform_3(%arg0: i32) -> (i32, i32) {
    %c0_i32 = arith.constant 0 : i32
    %c0_i32_0 = arith.constant 0 : i32
    %c0_i32_1 = arith.constant 0 : i32
    return %c0_i32, %c0_i32_0 : i32, i32
  }
  func.func @transform_4(%arg0: i32) -> (i32, i32) {
    %c0_i32 = arith.constant 0 : i32
    %c0_i32_0 = arith.constant 0 : i32
    %c0_i32_1 = arith.constant 0 : i32
    return %c0_i32, %c0_i32_0 : i32, i32
  }
  func.func @transform_5(%arg0: i32) -> (i32, i32) {
    %c0_i32 = arith.constant 0 : i32
    %c0_i32_0 = arith.constant 0 : i32
    %c0_i32_1 = arith.constant 0 : i32
    return %c0_i32, %c0_i32_0 : i32, i32
  }
  func.func @transform_6(%arg0: i32) -> (i32, i32) {
    %c0_i32 = arith.constant 0 : i32
    %c0_i32_0 = arith.constant 0 : i32
    %c0_i32_1 = arith.constant 0 : i32
    return %c0_i32, %c0_i32_0 : i32, i32
  }
  func.func @transform_7(%arg0: i32) -> (i32, i32) {
    %c0_i32 = arith.constant 0 : i32
    %c0_i32_0 = arith.constant 0 : i32
    return %arg0, %c0_i32 : i32, i32
  }
}

</mosaic_0001>

<bundles_post_ra>
// kernel: tpu_custom_call.1
= control target key start
LH: loop header
LB: loop body
LE: loop exit
PB: predicated region body
PF: predicated region fallthrough
CT: control target
= control target key end

     0   :  { %12 = vsyncpa [#allocation3], 0  ;;  %s719_s24 = smov 0   ;;  %s800_s0 = inlined_call_operand.vmem [shape: bf16[16,16], index: 0, kind: input, shape index: {}]   ;;  %s801_s1 = inlined_call_operand.hbm [shape: bf16[16,32], index: 1, kind: input, shape index: {}]   ;;  %s802_s2 = inlined_call_operand.vmem [shape: f32[1,32], index: 2, kind: input, shape index: {}]   ;;  %s803_s3 = inlined_call_operand.vmem [shape: bf16[32,32], index: 3, kind: input, shape index: {}]   ;;  %s804_s4 = inlined_call_operand.vmem [shape: f32[1,32], index: 4, kind: input, shape index: {}]   ;;  %s805_s5 = inlined_call_operand.vmem [shape: bf16[32,8], index: 5, kind: input, shape index: {}]   ;;  %s806_s6 = inlined_call_operand.vmem [shape: f32[1,8], index: 6, kind: input, shape index: {}]   ;;  %s807_s7 = inlined_call_operand.vmem [shape: f32[16,8], index: 7, kind: output, shape index: {}]  }
   0x1 LB: > { %s725_s25 = sadd.s32 4294967295, %s672_s24   ;;  %p556_p0 = scmp.ge.s32.totalorder %s672_s24, 1  ;;  %s672_s24 = sphi %s719_s24, %s18_s24  }
   0x2   : > { %p201_p1 = scmp.lt.s32.totalorder %s672_s24, 3  ;;  %s674_s26 = smov [#allocation2]  }
   0x3   : > { %s213_s27 = sshll.u32 %s674_s26, 4  ;;  %p808_p3 = scmp.eq.s32.totalorder %s725_s25, 0  ;;  %s214_s27 = int_to_ptr.vmem [resolvable:$true] %s213_s27 }
   0x4   : > { %p729_p2 = pnand %p556_p0, %p201_p1  ;;  %s634_s9 = scalar_lea.hbm %s801_s1, 128 }
   0x5   : > { %p635_p6 = scmp.ne.s32.totalorder %s801_s1, %s634_s9  ;;  %p641_p10 = scmp.lt.u32.totalorder %s634_s9, %s801_s1 }
   0x6   : > { %s810_s28 = scalar_select %p729_p2, 1, 0 }
   0x7   : > { %p610_p4 = pneg %p729_p2 }
   0x9   : > { %p738_p5 = pnand %p808_p3, %p610_p4 }
   0xb   : > { %p636_p7 = pneg %p738_p5 }
   0xd   : > { %p637_p8 = pnand %p636_p7, %p635_p6 }
   0xf   : > { %p638_p9 = pneg %p637_p8 }
  0x11   : > { %p643_p11 = pnand %p641_p10, %p638_p9 }
  0x13   : > { %646 = shalt.err (!%p643_p11)
}
  0x14   : > { %s647_s14 = scalar_lea.vmem %s214_s27, 128  ;;  %p655_p1 = scmp.lt.s32.totalorder %s214_s27, %s214_s27 }
  0x15   : > { %p648_p12 = scmp.ne.s32.totalorder %s214_s27, %s647_s14  ;;  %p656_p4 = scmp.lt.s32.totalorder %s647_s14, %s647_s14 }
  0x17   : > { %p650_p13 = pnand %p648_p12, %p636_p7  ;;  %p657_p3 = por %p656_p4, %p655_p1 }
  0x19   : > { %p651_p0 = pneg %p650_p13 }
  0x1b   : > { %p658_p2 = pnand %p657_p3, %p651_p0 }
  0x1d   : > { %661 = shalt.err (!%p658_p2)
}
  0x1e   : > { %s675_s15 = smov 64   ;;  %s676_s16 = smov 4  }
  0x1f   : > { %613 = dma.hbm_to_vmem [thread:$0]  (!%p738_p5), %s801_s1, 128, %s214_s27, [#allocation3], %s675_s15, %s675_s15, %s676_s16  }
  0x20   : > { %p812_p6 = scmp.ne.s32.totalorder %s810_s28, 0 }
  0x21   : > { %p813_p8 = scmp.eq.s32.totalorder (!%p812_p6), %s725_s25, 0 }
  0x22   : > { %251 = sbr.rel (%p812_p6) target bundleno = 699 (0x2bb), region = 48 }
  0x29   : > { %667 = dma.done.wait (%p813_p8), [#allocation3], 128   ;;  %p814_p7 = pmov %p813_p8 }
  0x2a   : > { %p281_p2 = scmp.lt.s32.totalorder %s725_s25, 1  ;;  %v677_v0 = vmov 0.0   ;;  %vm678_vm0 = vmmov 0   ;;  %v629_v1 = vld [vmem:[#allocation2] sm:$0xff]   ;;  %vm316_vm1 = vcmask 130048   ;;  %v631_v4 = vld [vmem:[%s803_s3 + $0x8] sm:$0xff]  }
  0x2b   : > { %669 = vsyncadd (%p814_p7), [#allocation3], 4294967168  ;;  %584 = vmatprep.subr.bf16.mxu0 %v677_v0  ;;  %586 = vmatprep.mubr.msk.bf16.mxu0 %vm678_vm0, %v677_v0  ;;  %v630_v3 = vld [vmem:[%s803_s3] sm:$0xff]   ;;  %vm380_vm2 = vcmask 261120   ;;  %v633_v14 = vld [vmem:[%s805_s5 + $0x8] sm:$0xff]   ;;  %vm487_vm3 = vcmask 64512  }
  0x2c   : > { %s816_s25 = smov (!%p281_p2, %s725_s25), 1  ;;  %590 = vmatprep.subr.bf16.mxu1 %v677_v0  ;;  %594 = vmatprep.mubr.msk.bf16.mxu1 %vm678_vm0, %v677_v0  ;;  %v632_v5 = vld [vmem:[%s805_s5] sm:$0xff]  }
  0x2d   : > { %s561_s19 = sshll.u32 %s816_s25, 2  ;;  %585 = vmatpush3.bf16.msra.mxu0 %v629_v1  ;;  %591 = vmatpush3.bf16.msra.mxu1 %v630_v3  ;;  %v563_v6 = vld [vmem:[%s802_s2] ss:$0 sm:$0xff]  ;;  %s562_s14 = sshll.u32 %s816_s25, 3 }
  0x2e   : > { %s284_s22 = scalar_lea.vmem %s800_s0, %s561_s19  ;;  %598 = vmatprep.subr.bf16.mxu0 %v677_v0  ;;  %592 = vmatprep.subr.bf16.mxu1 %v677_v0  ;;  %v566_v15 = vld [vmem:[%s804_s4] ss:$0 sm:$0xff]  ;;  %s288_s19 = scalar_lea.vmem %s807_s7, %s562_s14 }
  0x2f   : > { %v303_v2 = vld [vmem:[%s284_s22] sm:$0xf] }
  0x30   : > { %587 = vmatmul.mubr.msk.bf16.vlgmr.msra.gmra.mrb[0].mxu0 %vm316_vm1, %v303_v2  ;;  %v570_v23 = vld [vmem:[%s806_s6] ss:$0 sm:$0xff] }
  0x31   : > { %602 = vmatprep.mubr.msk.bf16.mxu0 %vm678_vm0, %v677_v0  ;;  %593 = vmatpush3.bf16.msra.mxu1 %v631_v4 }
  0x32   : > { %599 = vmatpush3.bf16.msra.mxu0 %v632_v5 }
  0x33   : > { %600 = vmatprep.subr.bf16.mxu0 %v677_v0 }
  0x36   : > { %601 = vmatpush3.bf16.msra.mxu0 %v633_v14 }
 0x103   : > { %v354_v7 = vpop.f32.mrb[0].mxu0 }
 0x104   : > { %v355_v8 = vadd.f32 %v563_v6, %v354_v7  ;;  %v588_v9 = vpop.f32.mrb[1].mxu0 }
 0x105   : > { %v357_v10 = vpop.f32.mrb[2].mxu0 }
 0x106   : > { %v360_v11 = vmax.f32 %v355_v8, 0.0  ;;  %v589_v12 = vpop.f32.mrb[3].mxu0 }
 0x108   : > { %v361_v13 = vpack.c.bf16 %v360_v11, %v360_v11 }
 0x10a   : > { %595 = vmatmul.mubr.msk.bf16.vlgmr.msra.gmra.mrb[0].mxu1 %vm380_vm2, %v361_v13 }
 0x1dd   : > { %v418_v16 = vpop.f32.mrb[0].mxu1 }
 0x1de   : > { %v419_v17 = vadd.f32 %v566_v15, %v418_v16  ;;  %v596_v18 = vpop.f32.mrb[1].mxu1 }
 0x1df   : > { %v421_v19 = vpop.f32.mrb[2].mxu1 }
 0x1e0   : > { %v424_v20 = vmax.f32 %v419_v17, 0.0  ;;  %v597_v21 = vpop.f32.mrb[3].mxu1 }
 0x1e2   : > { %v425_v22 = vpack.c.bf16 %v424_v20, %v424_v20 }
 0x1e4   : > { %603 = vmatmul.mubr.msk.bf16.vlgmr.msra.gmra.mrb[4].mxu0 %vm380_vm2, %v425_v22 }
 0x2b7   : > { %v481_v24 = vpop.f32.mrb[4].mxu0 }
 0x2b8   : > { %v482_v25 = vadd.f32 %v570_v23, %v481_v24  ;;  %v604_v26 = vpop.f32.mrb[5].mxu0 }
 0x2b9   : > { %v484_v27 = vpop.f32.mrb[6].mxu0 }
 0x2ba   : > { %488 = vst.msk [vmem:[%s288_s19] sm:$0xff] %vm487_vm3, %v482_v25  ;;  %v605_v28 = vpop.f32.mrb[7].mxu0 }
 0x2bb PF: > { %s18_s24 = sadd.s32 1, %s672_s24  }
 0x2bc   : > { %p15_p3 = scmp.ge.s32.totalorder %s18_s24, 4  }
 0x2be   :  { %17 = sbr.rel (!%p15_p3) target bundleno = 1 (0x1), region = 83 }
 0x2c5   :  { %508 = vsyncpa [#allocation3], 1 }
 0x2c6   :  { %510 = vsyncpa [#allocation3 + $0x1], 1 }

</bundles_post_ra>
